<compile_context>
chip_gen: v7x
topology: tpu7x:2x2x1
jax: 0.10.0
libtpu: 0.0.40
codegen_flags: <defaults>
</compile_context>

<pallas_src>
import functools

import jax
import jax.numpy as jnp
from jax.experimental import pallas as pl
from jax.experimental.pallas import tpu as pltpu

BN_EPS = 1e-5


def _round_up(x, m):
    return (x + m - 1) // m * m


# --------------------------------------------------------------------------------------
# Pass 1: per-core partial BatchNorm statistics of h = x @ W1.
# --------------------------------------------------------------------------------------
def bn_stats_kernel(x_ref, w1_ref, ss_ref, *, tb, nb_per_core, batch):
    # x_ref:  [TB, IN] (compute dtype)    w1_ref: [IN, H_pad] (compute dtype)
    # ss_ref: [2, H_pad] f32 resident accumulator for THIS core (row0=sum, row1=sumsq)
    c = pl.program_id(0)   # core-split ("parallel") axis
    j = pl.program_id(1)   # reduction ("arbitrary") axis

    @pl.when(j == 0)
    def _():
        ss_ref[...] = jnp.zeros_like(ss_ref)

    h = jnp.dot(x_ref[...], w1_ref[...], preferred_element_type=jnp.float32)

    # Row mask against the *unclamped* global tile index: batch-tail rows and whole
    # duplicate tiles (when NB is not divisible by the core count) contribute zero.
    tile = c * nb_per_core + j
    row = jax.lax.broadcasted_iota(jnp.int32, h.shape, 0) + tile * tb
    hm = jnp.where(row < batch, h, 0.0)

    # Single [2, H_pad] accumulate (avoids two masked sub-sublane RMWs per step).
    ss_ref[...] += jnp.concatenate(
        [jnp.sum(hm, axis=0, keepdims=True),
         jnp.sum(hm * hm, axis=0, keepdims=True)], axis=0)


# --------------------------------------------------------------------------------------
# Pass 2: normalized forward producing a lane-dense [1, TB] output tile per grid step.
# --------------------------------------------------------------------------------------
def cgm_forward_kernel(x_ref, w1_ref, ss_ref, w2_ref, b2_ref, o_ref):
    # x_ref:  [TB, IN]     w1_ref: [IN, H_pad]     ss_ref: [2, H_pad] (scale, shift)
    # w2_ref: [8, H_pad] (row-replicated w2)       b2_ref: [1, 1] in SMEM
    # o_ref:  [1, TB]  (batch on the lane axis -> unmasked lane-dense stores)
    h = jnp.dot(x_ref[...], w1_ref[...], preferred_element_type=jnp.float32)
    h = jnp.maximum(h * ss_ref[0:1, :] + ss_ref[1:2, :], 0.0)      # fused BN + ReLU
    # [8, H_pad] x [TB, H_pad] contracted over H -> [8, TB]: batch ends up on lanes.
    z = jax.lax.dot_general(
        w2_ref[...], h,
        dimension_numbers=(((1,), (1,)), ((), ())),
        preferred_element_type=jnp.float32,
    )
    # Only row 0 is needed -> 1/8 of the sigmoid work and output traffic.
    o_ref[...] = jax.nn.sigmoid(z[0:1, :] + b2_ref[0, 0])


# --------------------------------------------------------------------------------------
# Parameter preparation (hoisted out of the per-batch path; run once per model).
# --------------------------------------------------------------------------------------
def prepare_params(w1, b1, gamma, beta, w2, b2, *, compute_dtype=jnp.bfloat16):
    """Pads/casts parameters once. b1 is accepted for interface parity but unused:
    under training-mode BatchNorm the first-layer bias cancels exactly."""
    del b1  # cancels in train-mode BatchNorm
    in_features, hidden = w1.shape
    h_pad = _round_up(hidden, 128)
    f32 = jnp.float32
    # Padding columns carry gamma = beta = w2 = 0 and W1 = 0 -> they contribute nothing.
    w1p = jnp.zeros((in_features, h_pad), compute_dtype).at[:, :hidden].set(
        w1.astype(compute_dtype))
    gammap = jnp.zeros((1, h_pad), f32).at[:, :hidden].set(
        jnp.asarray(gamma, f32).reshape(1, hidden))
    betap = jnp.zeros((1, h_pad), f32).at[:, :hidden].set(
        jnp.asarray(beta, f32).reshape(1, hidden))
    w2p = jnp.zeros((8, h_pad), f32).at[:, :hidden].set(
        jnp.broadcast_to(jnp.asarray(w2, f32).reshape(1, hidden), (8, hidden)))
    b2s = jnp.asarray(b2, f32).reshape(1, 1)
    return w1p, gammap, betap, w2p, b2s


# --------------------------------------------------------------------------------------
# Forward
# --------------------------------------------------------------------------------------
@functools.partial(jax.jit, static_argnames=("tb",))
def cgm_level_voting(x, params, *, tb=4096):
    """Forward pass. x: [B, 100] -> [B] float32 (squeezed sigmoid outputs).

    params: output of prepare_params(). x is cast to the prepared compute dtype
    (feed bf16 x directly to avoid the cast entirely).
    """
    w1p, gammap, betap, w2p, b2s = params
    B, IN = x.shape
    assert w1p.shape[0] == IN, (w1p.shape, IN)
    H_pad = w1p.shape[1]
    compute_dtype = w1p.dtype
    if x.dtype != compute_dtype:
        x = x.astype(compute_dtype)

    TB = min(_round_up(tb, 128), _round_up(B, 128))
    NB = pl.cdiv(B, TB)                 # batch tiles (last one may be partial)
    NC = 2 if NB >= 2 else 1            # 2-way core split of pass 1 (megacore on v7x)
    nbpc = pl.cdiv(NB, NC)              # tiles per core

    # ---- pass 1: per-core partial sums of h and h^2 ----------------------------------
    ss_partial = pl.pallas_call(
        functools.partial(bn_stats_kernel, tb=TB, nb_per_core=nbpc, batch=B),
        out_shape=jax.ShapeDtypeStruct((NC, 2, H_pad), jnp.float32),
        grid=(NC, nbpc),
        in_specs=[
            # Streamed x tiles; clamp the tile index so a duplicate tile (odd NB split)
            # never issues a fully out-of-bounds DMA. Its rows are masked in-kernel.
            pl.BlockSpec((TB, IN),
                         lambda c, j: (jnp.minimum(c * nbpc + j, NB - 1), 0)),
            pl.BlockSpec((IN, H_pad), lambda c, j: (0, 0)),       # resident W1
        ],
        out_specs=pl.BlockSpec((None, 2, H_pad), lambda c, j: (c, 0, 0)),
        compiler_params=pltpu.CompilerParams(
            dimension_semantics=("parallel", "arbitrary")),
    )(x, w1p)

    # ---- finalize BN scale/shift in plain JAX (a [2*NC, H_pad] reduction: negligible) -
    sums = jnp.sum(ss_partial, axis=0)                      # [2, H_pad]
    mean = sums[0:1, :] * (1.0 / B)
    var = jnp.maximum(sums[1:2, :] * (1.0 / B) - mean * mean, 0.0)  # biased (train mode)
    scale = gammap * jax.lax.rsqrt(var + BN_EPS)
    shift = betap - mean * scale
    ss = jnp.concatenate([scale, shift], axis=0)             # [2, H_pad] f32

    # ---- pass 2: normalized forward, lane-dense (1, TB) output tiles ------------------
    out = pl.pallas_call(
        cgm_forward_kernel,
        out_shape=jax.ShapeDtypeStruct((1, NB * TB), jnp.float32),
        grid=(NB,),
        in_specs=[
            pl.BlockSpec((TB, IN), lambda i: (i, 0)),             # streamed x tiles
            pl.BlockSpec((IN, H_pad), lambda i: (0, 0)),          # resident W1
            pl.BlockSpec((2, H_pad), lambda i: (0, 0)),           # resident scale/shift
            pl.BlockSpec((8, H_pad), lambda i: (0, 0)),           # resident w2 (replicated)
            pl.BlockSpec(memory_space=pltpu.MemorySpace.SMEM),    # b2 scalar
        ],
        out_specs=pl.BlockSpec((1, TB), lambda i: (0, i)),        # lane-dense stores
        compiler_params=pltpu.CompilerParams(
            dimension_semantics=("parallel",)),
    )(x, w1p, ss, w2p, b2s)

    # Drop batch-tail garbage columns and squeeze -> [B].
    return out[0, :B]


def init_params(key, in_features=100, hidden_size=32):
    """Deterministic synthetic parameters matching the module's shapes."""
    k1, k2, k3, k4 = jax.random.split(key, 4)
    bound1 = 1.0 / jnp.sqrt(in_features)
    w1 = jax.random.uniform(k1, (in_features, hidden_size), jnp.float32,
                            -bound1, bound1)
    b1 = jax.random.uniform(k2, (1, hidden_size), jnp.float32, -bound1, bound1)
    gamma = jnp.ones((1, hidden_size), jnp.float32)
    beta = jnp.zeros((1, hidden_size), jnp.float32)
    bound2 = 1.0 / jnp.sqrt(hidden_size)
    w2 = jax.random.uniform(k3, (hidden_size, 1), jnp.float32, -bound2, bound2)
    b2 = jax.random.uniform(k4, (1, 1), jnp.float32, -bound2, bound2)
    return w1, b1, gamma, beta, w2, b2


if __name__ == "__main__":
    key = jax.random.PRNGKey(0)
    kx, kp = jax.random.split(key)

    B, IN, H = 200, 100, 32
    x = jax.random.normal(kx, (B, IN), jnp.float32)
    w1, b1, gamma, beta, w2, b2 = init_params(kp, in_features=IN, hidden_size=H)

    # Pure-JAX reference of the same forward (train-mode BatchNorm, b1 included — it
    # cancels exactly, so results must match).
    h_ref = x @ w1 + b1
    m = h_ref.mean(0, keepdims=True)
    v = ((h_ref - m) ** 2).mean(0, keepdims=True)
    h_ref = gamma * (h_ref - m) / jnp.sqrt(v + BN_EPS) + beta
    h_ref = jnp.maximum(h_ref, 0.0)
    ref = jax.nn.sigmoid(h_ref @ w2 + b2)[:, 0]

    # f32 path (tight tolerance). tb=128 -> NB=2 tiles, 2-way core split of pass 1,
    # and a partial last tile (rows 128..199 valid, 200..255 masked) to exercise masking.
    params_f32 = prepare_params(w1, b1, gamma, beta, w2, b2,
                                compute_dtype=jnp.float32)
    out_f32 = jax.block_until_ready(cgm_level_voting(x, params_f32, tb=128))
    assert out_f32.shape == (B,), out_f32.shape
    assert jnp.allclose(out_f32, ref, atol=1e-4, rtol=1e-4), (out_f32, ref)

    # bf16 x/W1 streams (default; f32 accumulation + f32 BN math) — loosened tolerance.
    params_bf16 = prepare_params(w1, b1, gamma, beta, w2, b2)
    out_bf16 = jax.block_until_ready(cgm_level_voting(x, params_bf16, tb=128))
    assert out_bf16.shape == (B,), out_bf16.shape
    assert jnp.allclose(out_bf16, ref, atol=1e-2, rtol=1e-2), (out_bf16, ref)

    print("KERNEL_OK")
</pallas_src>

<mosaic_0001>
module attributes {stable_mosaic.version = 11 : i64} {
  func.func @bn_stats_kernel(%arg0: i32, %arg1: i32, %arg2: memref<128x100xf32, #tpu.memory_space<vmem>>, %arg3: memref<100x128xf32, #tpu.memory_space<vmem>>, %arg4: memref<1x2x128xf32, #tpu.memory_space<vmem>>) attributes {dimension_semantics = [#tpu.dimension_semantics<parallel>, #tpu.dimension_semantics<arbitrary>], iteration_bounds = array<i64: 2, 1>, scalar_prefetch = 0 : i64, scratch_operands = 0 : i64, tpu.core_type = #tpu.core_type<tc>, window_params = [{transform_indices = @transform_0, window_bounds = array<i64: 128, 100>}, {pipeline_mode = #tpu.pipeline_mode<synchronous>, transform_indices = @transform_1, window_bounds = array<i64: 100, 128>}, {transform_indices = @transform_2, window_bounds = array<i64: 1, 2, 128>}]} {
    %c0_i32 = arith.constant 0 : i32
    %0 = arith.cmpi eq, %arg1, %c0_i32 : i32
    %1 = arith.extui %0 : i1 to i32
    %c0_i32_0 = arith.constant 0 : i32
    %2 = arith.cmpi ne, %1, %c0_i32_0 : i32
    scf.if %2 {
      %cst_13 = arith.constant 0.000000e+00 : f32
      %28 = vector.broadcast %cst_13 : f32 to vector<2x128xf32>
      %c0_14 = arith.constant 0 : index
      %c0_15 = arith.constant 0 : index
      %c0_16 = arith.constant 0 : index
      %29 = vector.load %arg4[%c0_14, %c0_15, %c0_16] : memref<1x2x128xf32, #tpu.memory_space<vmem>>, vector<1x2x128xf32>
      %30 = vector.shape_cast %29 : vector<1x2x128xf32> to vector<2x128xf32>
      %31 = vector.shape_cast %28 : vector<2x128xf32> to vector<1x2x128xf32>
      tpu.vector_store %arg4[%c0_14, %c0_15, %c0_16], %31 {strides = array<i32>} : memref<1x2x128xf32, #tpu.memory_space<vmem>>, vector<1x2x128xf32>,
    } else {
    }
    %c0 = arith.constant 0 : index
    %c0_1 = arith.constant 0 : index
    %3 = vector.load %arg2[%c0, %c0_1] : memref<128x100xf32, #tpu.memory_space<vmem>>, vector<128x100xf32>
    %c0_2 = arith.constant 0 : index
    %c0_3 = arith.constant 0 : index
    %4 = vector.load %arg3[%c0_2, %c0_3] : memref<100x128xf32, #tpu.memory_space<vmem>>, vector<100x128xf32>
    %cst = arith.constant dense<0.000000e+00> : vector<128x128xf32>
    %5 = tpu.matmul %3, %4, %cst {dimension_numbers = #tpu.dot_dimension_numbers<[1], [0], [0], [1], [0, 0, 1, 1], [], []>} : vector<128x100xf32>, vector<100x128xf32>, vector<128x128xf32> -> vector<128x128xf32>
    %c1_i32 = arith.constant 1 : i32
    %6 = arith.muli %arg0, %c1_i32 : i32
    %7 = arith.addi %6, %arg1 : i32
    %8 = tpu.iota {dimensions = array<i32: 0>} : vector<128x128xi32>
    %c128_i32 = arith.constant 128 : i32
    %9 = arith.muli %7, %c128_i32 : i32
    %10 = vector.broadcast %9 : i32 to vector<128x128xi32>
    %11 = arith.addi %8, %10 : vector<128x128xi32>
    %c200_i32 = arith.constant 200 : i32
    %12 = vector.broadcast %c200_i32 : i32 to vector<128x128xi32>
    %13 = arith.cmpi slt, %11, %12 : vector<128x128xi32>
    %cst_4 = arith.constant 0.000000e+00 : f32
    %14 = vector.broadcast %cst_4 : f32 to vector<128x128xf32>
    %15 = arith.select %13, %5, %14 : vector<128x128xi1>, vector<128x128xf32>
    %c0_5 = arith.constant 0 : index
    %c0_6 = arith.constant 0 : index
    %c0_7 = arith.constant 0 : index
    %16 = vector.load %arg4[%c0_5, %c0_6, %c0_7] : memref<1x2x128xf32, #tpu.memory_space<vmem>>, vector<1x2x128xf32>
    %17 = vector.shape_cast %16 : vector<1x2x128xf32> to vector<2x128xf32>
    %cst_8 = arith.constant dense<0.000000e+00> : vector<128xf32>
    %18 = vector.multi_reduction <add>, %15, %cst_8 [0] : vector<128x128xf32> to vector<128xf32>
    %19 = vector.shape_cast %18 : vector<128xf32> to vector<1x128xf32>
    %20 = arith.mulf %15, %15 : vector<128x128xf32>
    %cst_9 = arith.constant dense<0.000000e+00> : vector<128xf32>
    %21 = vector.multi_reduction <add>, %20, %cst_9 [0] : vector<128x128xf32> to vector<128xf32>
    %22 = vector.shape_cast %21 : vector<128xf32> to vector<1x128xf32>
    %23 = tpu.concatenate %19, %22 in 0 : vector<1x128xf32>, vector<1x128xf32> -> vector<2x128xf32>
    %24 = arith.addf %17, %23 : vector<2x128xf32>
    %c0_10 = arith.constant 0 : index
    %c0_11 = arith.constant 0 : index
    %c0_12 = arith.constant 0 : index
    %25 = vector.load %arg4[%c0_10, %c0_11, %c0_12] : memref<1x2x128xf32, #tpu.memory_space<vmem>>, vector<1x2x128xf32>
    %26 = vector.shape_cast %25 : vector<1x2x128xf32> to vector<2x128xf32>
    %27 = vector.shape_cast %24 : vector<2x128xf32> to vector<1x2x128xf32>
    tpu.vector_store %arg4[%c0_10, %c0_11, %c0_12], %27 {strides = array<i32>} : memref<1x2x128xf32, #tpu.memory_space<vmem>>, vector<1x2x128xf32>,
    return
  }
  func.func @transform_0(%arg0: i32, %arg1: i32) -> (i32, i32) {
    %c1_i32 = arith.constant 1 : i32
    %0 = arith.muli %arg0, %c1_i32 : i32
    %1 = arith.addi %0, %arg1 : i32
    %c1_i32_0 = arith.constant 1 : i32
    %2 = arith.minsi %1, %c1_i32_0 : i32
    %c0_i32 = arith.constant 0 : i32
    %c0_i32_1 = arith.constant 0 : i32
    return %2, %c0_i32 : i32, i32
  }
  func.func @transform_1(%arg0: i32, %arg1: i32) -> (i32, i32) {
    %c0_i32 = arith.constant 0 : i32
    %c0_i32_0 = arith.constant 0 : i32
    %c0_i32_1 = arith.constant 0 : i32
    return %c0_i32, %c0_i32_0 : i32, i32
  }
  func.func @transform_2(%arg0: i32, %arg1: i32) -> (i32, i32, i32) {
    %c0_i32 = arith.constant 0 : i32
    %c0_i32_0 = arith.constant 0 : i32
    %c0_i32_1 = arith.constant 0 : i32
    return %arg0, %c0_i32, %c0_i32_0 : i32, i32, i32
  }
}

module attributes {stable_mosaic.version = 11 : i64} {
  func.func @cgm_forward_kernel(%arg0: i32, %arg1: memref<128x100xf32, #tpu.memory_space<vmem>>, %arg2: memref<100x128xf32, #tpu.memory_space<vmem>>, %arg3: memref<2x128xf32, #tpu.memory_space<vmem>>, %arg4: memref<8x128xf32, #tpu.memory_space<vmem>>, %arg5: memref<1x1xf32, #tpu.memory_space<smem>>, %arg6: memref<1x128xf32, #tpu.memory_space<vmem>>) attributes {dimension_semantics = [#tpu.dimension_semantics<parallel>], iteration_bounds = array<i64: 2>, scalar_prefetch = 0 : i64, scratch_operands = 0 : i64, tpu.core_type = #tpu.core_type<tc>, window_params = [{transform_indices = @transform_0, window_bounds = array<i64: 128, 100>}, {pipeline_mode = #tpu.pipeline_mode<synchronous>, transform_indices = @transform_1, window_bounds = array<i64: 100, 128>}, {pipeline_mode = #tpu.pipeline_mode<synchronous>, transform_indices = @transform_2, window_bounds = array<i64: 2, 128>}, {pipeline_mode = #tpu.pipeline_mode<synchronous>, transform_indices = @transform_3, window_bounds = array<i64: 8, 128>}, {transform_indices = @transform_4, window_bounds = array<i64: 1, 1>}, {transform_indices = @transform_5, window_bounds = array<i64: 1, 128>}]} {
    %c0 = arith.constant 0 : index
    %c0_0 = arith.constant 0 : index
    %0 = vector.load %arg1[%c0, %c0_0] : memref<128x100xf32, #tpu.memory_space<vmem>>, vector<128x100xf32>
    %c0_1 = arith.constant 0 : index
    %c0_2 = arith.constant 0 : index
    %1 = vector.load %arg2[%c0_1, %c0_2] : memref<100x128xf32, #tpu.memory_space<vmem>>, vector<100x128xf32>
    %cst = arith.constant dense<0.000000e+00> : vector<128x128xf32>
    %2 = tpu.matmul %0, %1, %cst {dimension_numbers = #tpu.dot_dimension_numbers<[1], [0], [0], [1], [0, 0, 1, 1], [], []>} : vector<128x100xf32>, vector<100x128xf32>, vector<128x128xf32> -> vector<128x128xf32>
    %c0_3 = arith.constant 0 : index
    %c0_4 = arith.constant 0 : index
    %3 = vector.load %arg3[%c0_3, %c0_4] : memref<2x128xf32, #tpu.memory_space<vmem>>, vector<1x128xf32>
    %4 = vector.broadcast %3 : vector<1x128xf32> to vector<128x128xf32>
    %5 = arith.mulf %2, %4 : vector<128x128xf32>
    %c1 = arith.constant 1 : index
    %c0_5 = arith.constant 0 : index
    %6 = vector.load %arg3[%c1, %c0_5] : memref<2x128xf32, #tpu.memory_space<vmem>>, vector<1x128xf32>
    %7 = vector.broadcast %6 : vector<1x128xf32> to vector<128x128xf32>
    %8 = arith.addf %5, %7 : vector<128x128xf32>
    %cst_6 = arith.constant 0.000000e+00 : f32
    %9 = vector.broadcast %cst_6 : f32 to vector<128x128xf32>
    %10 = arith.maximumf %8, %9 : vector<128x128xf32>
    %c0_7 = arith.constant 0 : index
    %c0_8 = arith.constant 0 : index
    %11 = vector.load %arg4[%c0_7, %c0_8] : memref<8x128xf32, #tpu.memory_space<vmem>>, vector<8x128xf32>
    %cst_9 = arith.constant dense<0.000000e+00> : vector<8x128xf32>
    %12 = tpu.matmul %11, %10, %cst_9 {dimension_numbers = #tpu.dot_dimension_numbers<[1], [1], [0], [0], [0, 0, 1, 0], [], []>} : vector<8x128xf32>, vector<128x128xf32>, vector<8x128xf32> -> vector<8x128xf32>
    %13 = vector.extract_strided_slice %12 {offsets = [0, 0], sizes = [1, 128], strides = [1, 1]} : vector<8x128xf32> to vector<1x128xf32>
    %c0_10 = arith.constant 0 : index
    %c0_11 = arith.constant 0 : index
    %14 = memref.load %arg5[%c0_10, %c0_11] : memref<1x1xf32, #tpu.memory_space<smem>>
    %15 = vector.broadcast %14 : f32 to vector<1x128xf32>
    %16 = arith.addf %13, %15 : vector<1x128xf32>
    %17 = arith.negf %16 : vector<1x128xf32>
    %18 = math.exp %17 : vector<1x128xf32>
    %cst_12 = arith.constant 1.000000e+00 : f32
    %19 = vector.broadcast %cst_12 : f32 to vector<1x128xf32>
    %20 = arith.addf %19, %18 : vector<1x128xf32>
    %21 = arith.divf %19, %20 : vector<1x128xf32>
    %c0_13 = arith.constant 0 : index
    %c0_14 = arith.constant 0 : index
    %22 = vector.load %arg6[%c0_13, %c0_14] : memref<1x128xf32, #tpu.memory_space<vmem>>, vector<1x128xf32>
    tpu.vector_store %arg6[%c0_13, %c0_14], %21 {strides = array<i32>} : memref<1x128xf32, #tpu.memory_space<vmem>>, vector<1x128xf32>,
    return
  }
  func.func @transform_0(%arg0: i32) -> (i32, i32) {
    %c0_i32 = arith.constant 0 : i32
    %c0_i32_0 = arith.constant 0 : i32
    return %arg0, %c0_i32 : i32, i32
  }
  func.func @transform_1(%arg0: i32) -> (i32, i32) {
    %c0_i32 = arith.constant 0 : i32
    %c0_i32_0 = arith.constant 0 : i32
    %c0_i32_1 = arith.constant 0 : i32
    return %c0_i32, %c0_i32_0 : i32, i32
  }
  func.func @transform_2(%arg0: i32) -> (i32, i32) {
    %c0_i32 = arith.constant 0 : i32
    %c0_i32_0 = arith.constant 0 : i32
    %c0_i32_1 = arith.constant 0 : i32
    return %c0_i32, %c0_i32_0 : i32, i32
  }
  func.func @transform_3(%arg0: i32) -> (i32, i32) {
    %c0_i32 = arith.constant 0 : i32
    %c0_i32_0 = arith.constant 0 : i32
    %c0_i32_1 = arith.constant 0 : i32
    return %c0_i32, %c0_i32_0 : i32, i32
  }
  func.func @transform_4(%arg0: i32) -> (i32, i32) {
    %c0_i32 = arith.constant 0 : i32
    %c0_i32_0 = arith.constant 0 : i32
    %c0_i32_1 = arith.constant 0 : i32
    return %c0_i32, %c0_i32_0 : i32, i32
  }
  func.func @transform_5(%arg0: i32) -> (i32, i32) {
    %c0_i32 = arith.constant 0 : i32
    %c0_i32_0 = arith.constant 0 : i32
    return %c0_i32, %arg0 : i32, i32
  }
}

</mosaic_0001>

<bundles_post_ra>
// kernel: cgm_level_voting.3
= control target key start
LH: loop header
LB: loop body
LE: loop exit
PB: predicated region body
PF: predicated region fallthrough
CT: control target
= control target key end

     0   :  { %s1259_s0 = inlined_call_operand.vmem [shape: f32[200,100], index: 0, kind: input, shape index: {}]   ;;  %s1260_s1 = inlined_call_operand.vmem [shape: f32[100,128], index: 1, kind: input, shape index: {}]   ;;  %s1261_s2 = inlined_call_operand.vmem [shape: f32[2,128], index: 2, kind: input, shape index: {}]   ;;  %s1262_s3 = inlined_call_operand.vmem [shape: f32[8,128], index: 3, kind: input, shape index: {}]   ;;  %s1263_s4 = inlined_call_operand.<no memory space> [shape: f32[1,1], index: 4, kind: input, shape index: {}]   ;;  %s1264_s5 = inlined_call_operand.hbm [shape: f32[1,256], index: 5, kind: output, shape index: {}]  }
   0x1   :  { %10 = sst [smem:[#allocation2]] %s1263_s4 }
   0x2   :  { %11 = vsyncpa [#allocation4], 0 }
   0x3   :  { %13 = vsyncpa [#allocation4 + $0x1], 0  ;;  %s1034_s20 = smov 0   ;;  %s1036_s21 = smov 0  }
   0x4   :  { %s1038_s22 = smov 0   ;;  %s1040_s23 = smov 0  }
   0x5 LB: > { %s678_s4 = sadd.s32 4294967295, %s995_s23   ;;  %s679_s24 = sadd.s32 4294967294, %s995_s23   ;;  %s995_s23 = sphi %s1040_s23, %s1270_s23   ;;  %s991_s22 = sphi %s1038_s22, %s1269_s22   ;;  %s987_s21 = sphi %s1036_s21, %s1268_s21   ;;  %s983_s20 = sphi %s1034_s20, %s1267_s20  }
   0x6   : > { %s1057_s25 = sadd.s32 1, %s995_s23   ;;  %s136_s26 = sadd.s32 1, %s991_s22 }
   0x7   : > { %s133_s27 = ssub.s32 %s995_s23, %s1057_s25  ;;  %p146_p0 = scmp.ne.s32.totalorder %s991_s22, %s987_s21 }
   0x8   : > { %p134_p1 = scmp.eq.s32.totalorder %s133_s27, 0  ;;  %p147_p2 = scmp.eq.s32.totalorder %s678_s4, 1 }
   0x9   : > { %p152_p3 = scmp.ne.s32.totalorder %s987_s21, %s983_s20  ;;  %p153_p4 = scmp.eq.s32.totalorder %s679_s24, 1 }
   0xa   : > { %s1067_s28 = scalar_select %p134_p1, %s991_s22, %s136_s26  }
   0xb   : > { %p1069_p5 = por %p147_p2, %p146_p0  ;;  %p1073_p6 = por %p153_p4, %p152_p3 }
   0xc   : > { %p682_p7 = scmp.ge.s32.totalorder %s995_s23, 1  ;;  %p200_p8 = scmp.lt.s32.totalorder %s995_s23, 3 }
   0xe   : > { %p201_p9 = pnand %p682_p7, %p200_p8 }
   0xf   : > { %v261_v0 = vld [vmem:[%s1260_s1] sm:$0xff] (!%p201_p9)  ;;  %v262_v1 = vld [vmem:[%s1260_s1 + $0x8] sm:$0xff] (!%p201_p9)  ;;  %v263_v2 = vld [vmem:[%s1260_s1 + $0x10] sm:$0xff] (!%p201_p9)  ;;  %s1088_s12 = sshll.u32 (!%p201_p9), %s678_s4, 4  ;;  %vm274_vm0 = vcmask (!%p201_p9), 818176   ;;  %vm323_vm1 = vcmask (!%p201_p9), 1043456  }
  0x10   : > { %204 = sbr.rel (%p201_p9) target bundleno = 582 (0x246), region = 40  ;;  %v839_v3 = vpack.c.bf16 (!%p201_p9), %v262_v1, %v261_v0  ;;  %v264_v4 = vld [vmem:[%s1260_s1 + $0x18] sm:$0xff] (!%p201_p9)  ;;  %p236_p10 = scmp.lt.s32.totalorder (!%p201_p9), %s1088_s12, 24  ;;  %v265_v6 = vld [vmem:[%s1260_s1 + $0x20] sm:$0xff] (!%p201_p9)  ;;  %v266_v7 = vld [vmem:[%s1260_s1 + $0x28] sm:$0xff] (!%p201_p9)  ;;  %v997_v35 = vmov (!%p201_p9), 0.0|0.0  }
  0x11   : > { %v843_v5 = vpack.c.bf16 (!%p201_p9), %v264_v4, %v263_v2  ;;  %v847_v8 = vpack.c.bf16 (!%p201_p9), %v266_v7, %v265_v6  ;;  %v267_v9 = vld [vmem:[%s1260_s1 + $0x30] sm:$0xff] (!%p201_p9)  ;;  %v268_v10 = vld [vmem:[%s1260_s1 + $0x38] sm:$0xff] (!%p201_p9)  ;;  %v269_v13 = vld [vmem:[%s1260_s1 + $0x40] sm:$0xff] (!%p201_p9)  ;;  %863 = vmatprep.subr.bf16.mxu1 (!%p201_p9), %v997_v35  ;;  %vm998_vm2 = vmmov (!%p201_p9), 0   ;;  %v999_v36 = vmov (!%p201_p9), 0.0   ;;  %s229_s10 = sand.u32 (!%p201_p9), 1, %s987_s21   ;;  %s1217_s16 = scalar_lea.hbm (!%p201_p9), %s1264_s5, %s1088_s12 }
  0x12   : > { %840 = vmatprep.subr.bf16.mxu0 (!%p201_p9), %v839_v3  ;;  %v851_v12 = vpack.c.bf16 (!%p201_p9), %v268_v10, %v267_v9  ;;  %v270_v14 = vld [vmem:[%s1260_s1 + $0x48] sm:$0xff] (!%p201_p9)  ;;  %v271_v16 = vld [vmem:[%s1260_s1 + $0x50] sm:$0xff] (!%p201_p9)  ;;  %v272_v17 = vld [vmem:[%s1260_s1 + $0x58] sm:$0xff] (!%p201_p9)  ;;  %836 = vmatprep.mubr.msk.f32.mxu1 (!%p201_p9), %vm998_vm2, %v999_v36  ;;  %s230_s11 = scalar_lea.vmem (!%p201_p9), [#allocation3], %s229_s10  ;;  %s612_s17 = scalar_lea.sflag (!%p201_p9), [#allocation4], %s229_s10 }
  0x13   : > { %842 = vmatpush3.bf16.msra.mxu0 (!%p201_p9), %v839_v3  ;;  %v855_v15 = vpack.c.bf16 (!%p201_p9), %v270_v14, %v269_v13  ;;  %v859_v18 = vpack.c.bf16 (!%p201_p9), %v272_v17, %v271_v16  ;;  %v273_v19 = vld [vmem:[%s1260_s1 + $0x60] sm:$0xf] (!%p201_p9)  ;;  %s624_s13 = sshll.u32 (!%p201_p9), %s230_s11, 4  ;;  %s1219_s13 = int_to_ptr.vmem [resolvable:$true] %s624_s13 }
  0x14   : > { %844 = vmatprep.subr.bf16.mxu0 (!%p201_p9), %v843_v5  ;;  %v1163_v37 = vld [vmem:[%s1261_s2] ss:$0 sm:$0xff] (!%p201_p9)  ;;  %v1168_v39 = vld [vmem:[%s1261_s2 + $0x1] ss:$0 sm:$0xff] (!%p201_p9)  ;;  %s933_s18 = scalar_lea.vmem (!%p201_p9), %s1219_s13, 16 }
  0x15   : > { %p934_p11 = scmp.ne.s32.totalorder (!%p201_p9), %s1219_s13, %s933_s18 }
  0x17   : > { %s237_s19 = scalar_select %p236_p10, %s1088_s12, 24  ;;  %846 = vmatpush3.bf16.msra.mxu0 %v843_v5 }
  0x18   : > { %848 = vmatprep.subr.bf16.mxu0 %v847_v8  ;;  %p935_p12 = pnand %p934_p11, %p1069_p5 }
  0x19   : > { %s684_s4 = sshll.u32 %s237_s19, 3  ;;  %s1000_s19 = smov [#allocation3]  }
  0x1a   : > { %s1110_s9 = scalar_lea.vmem %s1259_s0, %s684_s4  ;;  %p936_p13 = pneg %p935_p12 }
  0x1b   : > { %v245_v11 = vld [vmem:[%s1110_s9] sm:$0xff]  ;;  %850 = vmatpush3.bf16.msra.mxu0 %v847_v8  ;;  %v246_v20 = vld [vmem:[%s1110_s9 + $0x8] sm:$0xff]  ;;  %v247_v21 = vld [vmem:[%s1110_s9 + $0x10] sm:$0xff]  ;;  %s937_s4 = sshll.u32 %s1000_s19, 4  ;;  %s938_s4 = int_to_ptr.vmem [resolvable:$false] %s937_s4 }
  0x1c   : > { %780 = vmatprep.mubr.msk.f32.mxu0 %vm274_vm0, %v245_v11  ;;  %852 = vmatprep.subr.bf16.mxu0 %v851_v12  ;;  %v248_v22 = vld [vmem:[%s1110_s9 + $0x18] sm:$0xff]  ;;  %v249_v23 = vld [vmem:[%s1110_s9 + $0x20] sm:$0xff]  ;;  %v250_v24 = vld [vmem:[%s1110_s9 + $0x28] sm:$0xff]  ;;  %s939_s24 = scalar_lea.vmem %s938_s4, 32  ;;  %p940_p0 = scmp.lt.s32.totalorder %s1219_s13, %s938_s4 }
  0x1d   : > { %v251_v25 = vld [vmem:[%s1110_s9 + $0x30] sm:$0xff]  ;;  %v252_v26 = vld [vmem:[%s1110_s9 + $0x38] sm:$0xff]  ;;  %v253_v27 = vld [vmem:[%s1110_s9 + $0x40] sm:$0xff]  ;;  %p941_p1 = scmp.lt.s32.totalorder %s939_s24, %s933_s18 }
  0x1e   : > { %v254_v28 = vld [vmem:[%s1110_s9 + $0x48] sm:$0xff]  ;;  %v255_v29 = vld [vmem:[%s1110_s9 + $0x50] sm:$0xff]  ;;  %v256_v30 = vld [vmem:[%s1110_s9 + $0x58] sm:$0xff] }
  0x1f   : > { %854 = vmatpush3.bf16.msra.mxu0 %v851_v12  ;;  %v257_v31 = vld [vmem:[%s1110_s9 + $0x60] sm:$0xff]  ;;  %v258_v32 = vld [vmem:[%s1110_s9 + $0x68] sm:$0xff]  ;;  %v259_v33 = vld [vmem:[%s1110_s9 + $0x70] sm:$0xff]  ;;  %p942_p2 = por %p941_p1, %p940_p0 }
  0x20   : > { %856 = vmatprep.subr.bf16.mxu0 %v855_v15  ;;  %v260_v34 = vld [vmem:[%s1110_s9 + $0x78] sm:$0xff]  ;;  %s601_s9 = sld [smem:[#allocation2]] }
  0x21   : > { %p943_p3 = pnand %p942_p2, %p936_p13 }
  0x23   : > { %858 = vmatpush3.bf16.msra.mxu0 %v855_v15 }
  0x24   : > { %860 = vmatprep.subr.bf16.mxu0 %v859_v18 }
  0x27   : > { %862 = vmatpush3.bf16.msra.mxu0 %v859_v18 }
  0x28   : > { %778 = vmatprep.subr.msk.mxu0 %vm323_vm1, %v273_v19 }
  0x2b   : > { %779 = vmatpush3.msk.msra.mxu0 %vm323_vm1, %v273_v19 }
  0x2c   : > { %781 = vmatmul.mubr.msk.f32.vlgmr.msra.gmra.mrb[0].mxu0 %vm274_vm0, %v246_v20 }
  0x2d   : > { %783 = vmatprep.mubr.msk.f32.mxu0 %vm274_vm0, %v247_v21 }
  0x30   : > { %784 = vmatmul.mubr.msk.f32.gmra.mrb[2].mxu0 %vm274_vm0, %v248_v22 }
  0x31   : > { %786 = vmatprep.mubr.msk.f32.mxu0 %vm274_vm0, %v249_v23 }
  0x34   : > { %787 = vmatmul.mubr.msk.f32.gmra.mrb[4].mxu0 %vm274_vm0, %v250_v24 }
  0x35   : > { %789 = vmatprep.mubr.msk.f32.mxu0 %vm274_vm0, %v251_v25 }
  0x38   : > { %790 = vmatmul.mubr.msk.f32.gmra.mrb[6].mxu0 %vm274_vm0, %v252_v26 }
  0x39   : > { %792 = vmatprep.mubr.msk.f32.mxu0 %vm274_vm0, %v253_v27 }
  0x3c   : > { %793 = vmatmul.mubr.msk.f32.gmra.mrb[8].mxu0 %vm274_vm0, %v254_v28 }
  0x3d   : > { %795 = vmatprep.mubr.msk.f32.mxu0 %vm274_vm0, %v255_v29 }
  0x40   : > { %796 = vmatmul.mubr.msk.f32.gmra.mrb[10].mxu0 %vm274_vm0, %v256_v30 }
  0x41   : > { %798 = vmatprep.mubr.msk.f32.mxu0 %vm274_vm0, %v257_v31 }
  0x44   : > { %799 = vmatmul.mubr.msk.f32.gmra.mrb[12].mxu0 %vm274_vm0, %v258_v32 }
  0x45   : > { %801 = vmatprep.mubr.msk.f32.mxu0 %vm274_vm0, %v259_v33 }
  0x48   : > { %802 = vmatmul.mubr.msk.f32.gmra.mrb[14].mxu0 %vm274_vm0, %v260_v34 }
  0xff   : > { %v782_v38 = vpop.f32.mrb[0].mxu0 }
 0x100   : > { %v478_v40 = vmul.f32 %v782_v38, %v1163_v37  ;;  %v393_v41 = vpop.f32.mrb[1].mxu0 }
 0x101   : > { %v477_v42 = vmul.f32 %v1163_v37, %v393_v41 }
 0x102   : > { %v499_v43 = vadd.f32 %v1168_v39, %v478_v40 }
 0x103   : > { %v498_v44 = vadd.f32 %v1168_v39, %v477_v42  ;;  %v785_v45 = vpop.f32.mrb[2].mxu0 }
 0x104   : > { %v515_v46 = vmax.f32 %v499_v43, 0.0  ;;  %v480_v47 = vmul.f32 %v785_v45, %v1163_v37  ;;  %v403_v48 = vpop.f32.mrb[3].mxu0 }
 0x105   : > { %v514_v49 = vmax.f32 %v498_v44, 0.0  ;;  %v479_v50 = vmul.f32 %v1163_v37, %v403_v48 }
 0x106   : > { %v501_v51 = vadd.f32 %v1168_v39, %v480_v47 }
 0x107   : > { %v500_v52 = vadd.f32 %v1168_v39, %v479_v50  ;;  %v864_v53 = vpack.c.bf16 %v515_v46, %v514_v49  ;;  %v788_v54 = vpop.f32.mrb[4].mxu0 }
 0x108   : > { %v517_v55 = vmax.f32 %v501_v51, 0.0  ;;  %v482_v56 = vmul.f32 %v788_v54, %v1163_v37  ;;  %v413_v57 = vpop.f32.mrb[5].mxu0 }
 0x109   : > { %v516_v58 = vmax.f32 %v500_v52, 0.0  ;;  %865 = vmatpush3.bf16.xpose.msra.mxu1 %v864_v53  ;;  %v481_v59 = vmul.f32 %v1163_v37, %v413_v57 }
 0x10a   : > { %v503_v60 = vadd.f32 %v1168_v39, %v482_v56  ;;  %866 = vmatprep.subr.bf16.mxu1 %v997_v35 }
 0x10b   : > { %v502_v61 = vadd.f32 %v1168_v39, %v481_v59  ;;  %v867_v62 = vpack.c.bf16 %v517_v55, %v516_v58  ;;  %v791_v63 = vpop.f32.mrb[6].mxu0 }
 0x10c   : > { %v519_v0 = vmax.f32 %v503_v60, 0.0  ;;  %v484_v1 = vmul.f32 %v791_v63, %v1163_v37  ;;  %v423_v2 = vpop.f32.mrb[7].mxu0 }
 0x10d   : > { %v518_v3 = vmax.f32 %v502_v61, 0.0  ;;  %v483_v4 = vmul.f32 %v1163_v37, %v423_v2 }
 0x10e   : > { %v505_v5 = vadd.f32 %v1168_v39, %v484_v1 }
 0x10f   : > { %v504_v6 = vadd.f32 %v1168_v39, %v483_v4  ;;  %v870_v7 = vpack.c.bf16 %v519_v0, %v518_v3  ;;  %v794_v8 = vpop.f32.mrb[8].mxu0 }
 0x110   : > { %v521_v9 = vmax.f32 %v505_v5, 0.0  ;;  %v486_v10 = vmul.f32 %v794_v8, %v1163_v37  ;;  %v433_v11 = vpop.f32.mrb[9].mxu0 }
 0x111   : > { %868 = vmatpush3.bf16.xpose.msra.mxu1 %v867_v62  ;;  %v520_v12 = vmax.f32 %v504_v6, 0.0  ;;  %v485_v13 = vmul.f32 %v1163_v37, %v433_v11 }
 0x112   : > { %869 = vmatprep.subr.bf16.mxu1 %v997_v35  ;;  %v507_v14 = vadd.f32 %v1168_v39, %v486_v10 }
 0x113   : > { %v506_v15 = vadd.f32 %v1168_v39, %v485_v13  ;;  %v873_v16 = vpack.c.bf16 %v521_v9, %v520_v12  ;;  %v797_v17 = vpop.f32.mrb[10].mxu0 }
 0x114   : > { %v523_v18 = vmax.f32 %v507_v14, 0.0  ;;  %v488_v19 = vmul.f32 %v797_v17, %v1163_v37  ;;  %v443_v20 = vpop.f32.mrb[11].mxu0 }
 0x115   : > { %v522_v21 = vmax.f32 %v506_v15, 0.0  ;;  %v487_v22 = vmul.f32 %v1163_v37, %v443_v20 }
 0x116   : > { %v509_v23 = vadd.f32 %v1168_v39, %v488_v19 }
 0x117   : > { %v508_v24 = vadd.f32 %v1168_v39, %v487_v22  ;;  %v876_v25 = vpack.c.bf16 %v523_v18, %v522_v21  ;;  %v800_v26 = vpop.f32.mrb[12].mxu0 }
 0x118   : > { %v525_v27 = vmax.f32 %v509_v23, 0.0  ;;  %v490_v28 = vmul.f32 %v800_v26, %v1163_v37  ;;  %v453_v29 = vpop.f32.mrb[13].mxu0 }
 0x119   : > { %871 = vmatpush3.bf16.xpose.msra.mxu1 %v870_v7  ;;  %v524_v30 = vmax.f32 %v508_v24, 0.0  ;;  %v489_v31 = vmul.f32 %v1163_v37, %v453_v29 }
 0x11a   : > { %872 = vmatprep.subr.bf16.mxu1 %v997_v35  ;;  %v511_v32 = vadd.f32 %v1168_v39, %v490_v28 }
 0x11b   : > { %v510_v33 = vadd.f32 %v1168_v39, %v489_v31  ;;  %v879_v34 = vpack.c.bf16 %v525_v27, %v524_v30  ;;  %v803_v36 = vpop.f32.mrb[14].mxu0 }
 0x11c   : > { %v527_v38 = vmax.f32 %v511_v32, 0.0  ;;  %v492_v40 = vmul.f32 %v803_v36, %v1163_v37  ;;  %v463_v41 = vpop.f32.mrb[15].mxu0 }
 0x11d   : > { %v526_v42 = vmax.f32 %v510_v33, 0.0  ;;  %v491_v43 = vmul.f32 %v1163_v37, %v463_v41  ;;  %v530_v37 = vld [vmem:[%s1262_s3] sm:$0xff] }
 0x11e   : > { %v513_v44 = vadd.f32 %v1168_v39, %v492_v40 }
 0x11f   : > { %v512_v45 = vadd.f32 %v1168_v39, %v491_v43  ;;  %v882_v46 = vpack.c.bf16 %v527_v38, %v526_v42  ;;  %v602_v39 = vstv %s601_s9 }
 0x120   : > { %v529_v47 = vmax.f32 %v513_v44, 0.0 }
 0x121   : > { %874 = vmatpush3.bf16.xpose.msra.mxu1 %v873_v16  ;;  %v528_v48 = vmax.f32 %v512_v45, 0.0 }
 0x122   : > { %875 = vmatprep.subr.bf16.mxu1 %v997_v35 }
 0x123   : > { %v885_v49 = vpack.c.bf16 %v529_v47, %v528_v48 }
 0x129   : > { %877 = vmatpush3.bf16.xpose.msra.mxu1 %v876_v25 }
 0x12a   : > { %878 = vmatprep.subr.bf16.mxu1 %v997_v35 }
 0x131   : > { %880 = vmatpush3.bf16.xpose.msra.mxu1 %v879_v34 }
 0x132   : > { %881 = vmatprep.subr.bf16.mxu1 %v997_v35 }
 0x139   : > { %883 = vmatpush3.bf16.xpose.msra.mxu1 %v882_v46 }
 0x13a   : > { %884 = vmatprep.subr.bf16.mxu1 %v997_v35 }
 0x141   : > { %886 = vmatpush3.bf16.xpose.msra.mxu1 %v885_v49 }
 0x148   : > { %837 = vmatmul.mubr.f32.vlgmr.msra.gmra.mrb[0].mxu1 %v530_v37 }
 0x21b   : > { %v597_v50 = vpop.f32.mrb[0].mxu1 }
 0x21c   : > { %v603_v51 = vadd.f32 %v602_v39, %v597_v50  ;;  %v838_v52 = vpop.f32.mrb[1].mxu1 }
 0x21e   : > { %v704_v53 = vmul.f32 -1.442695, %v603_v51 }
 0x220   : > { %929 = vpow2.f32 %v704_v53 }
 0x22a   : > { %v930_v54 = vpop.eup %929 }
 0x22b   : > { %v607_v55 = vadd.f32 1.0, %v930_v54 }
 0x22d   : > { %931 = vrcp.f32 %v607_v55 }
 0x237   : > { %v932_v35 = vpop.eup %931 }
 0x238   : > { %610 = vst [vmem:[%s230_s11] sm:$0x1] %v932_v35 }
 0x239   : > { %946 = shalt.err (!%p943_p3)
}
 0x23a   : > { %s947_s12 = scalar_lea.hbm %s1217_s16, 16  ;;  %s951_s6 = scalar_lea.hbm %s1264_s5, 32 }
 0x23b   : > { %p948_p4 = scmp.ne.s32.totalorder %s1217_s16, %s947_s12  ;;  %p952_p9 = scmp.lt.u32.totalorder %s1217_s16, %s1264_s5 }
 0x23c   : > { %p953_p10 = scmp.lt.u32.totalorder %s951_s6, %s947_s12  ;;  %p955_p12 = scmp.lt.u32.totalorder %s947_s12, %s1217_s16 }
 0x23d   : > { %p949_p7 = pnand %p948_p4, %p1069_p5 }
 0x23e   : > { %p954_p11 = por %p953_p10, %p952_p9 }
 0x23f   : > { %p950_p8 = pneg %p949_p7 }
 0x240   : > { %p956_p13 = por %p955_p12, %p954_p11 }
 0x242   : > { %p957_p0 = pnand %p956_p13, %p950_p8 }
 0x244   : > { %960 = shalt.err (!%p957_p0)
}
 0x245   : > { %887 = dma.vmem_to_hbm [thread:$0]  (%p1069_p5), %s1219_s13, 16, %s1217_s16, %s612_s17  }
 0x246 PF: > { %p893_p1 = scmp.ge.s32.totalorder %s995_s23, 2  ;;  %s636_s9 = sand.u32 1, %s983_s20  }
 0x247   : > { %s637_s10 = scalar_lea.sflag [#allocation4], %s636_s9 }
 0x248   : > { %p890_p2 = pnand %p893_p1, %p1073_p6 }
 0x24a   : > { %978 = dma.done.wait (!%p890_p2), %s637_s10, 16  }
 0x24b   : > { %980 = vsyncadd (!%p890_p2), %s637_s10, 4294967280  ;;  %p16_p3 = scmp.ge.s32.totalorder %s1057_s25, 4   ;;  %s1267_s20 = smov %s987_s21 }
 0x24c   : > { %s1268_s21 = smov %s991_s22  ;;  %s1269_s22 = smov %s1067_s28 }
 0x24d   : > { %s1270_s23 = smov %s1057_s25  ;;  %18 = sbr.rel (!%p16_p3) target bundleno = 5 (0x5), region = 75 }
 0x254   :  { %641 = vsyncpa [#allocation4], 1 }
 0x255   :  { %643 = vsyncpa [#allocation4 + $0x1], 1 }

// kernel: cgm_level_voting.2
= control target key start
LH: loop header
LB: loop body
LE: loop exit
PB: predicated region body
PF: predicated region fallthrough
CT: control target
= control target key end

     0   :  { %7 = vsyncpa [#allocation3], 0  ;;  %s1271_s0 = inlined_call_operand.hbm [shape: f32[200,100], index: 0, kind: input, shape index: {}]   ;;  %s1272_s1 = inlined_call_operand.hbm [shape: f32[100,128], index: 1, kind: input, shape index: {}]   ;;  %s1273_s2 = inlined_call_operand.vmem [shape: f32[2,2,128], index: 2, kind: output, shape index: {}]  }
   0x1   :  { %9 = vsyncpa [#allocation3 + $0x1], 0 }
   0x2   :  { %10 = vsyncpa [#allocation5], 0  ;;  %s1011_s9 = smov 0   ;;  %s1013_s10 = smov 0  }
   0x3   :  { %s1015_s11 = smov 0   ;;  %s1017_s12 = smov 0  }
   0x4   :  { %s1019_s13 = smov 0   ;;  %s1021_s14 = smov 0  }
   0x5 LB: > { %s658_s15 = sadd.s32 4294967295, %s987_s14   ;;  %s28_s16 = sadd.s32 1, %s983_s13  ;;  %s987_s14 = sphi %s1021_s14, %s16_s14   ;;  %s983_s13 = sphi %s1019_s13, %s1291_s13   ;;  %s979_s12 = sphi %s1017_s12, %s1290_s12   ;;  %s975_s11 = sphi %s1015_s11, %s1289_s11   ;;  %s971_s10 = sphi %s1013_s10, %s1288_s10   ;;  %s967_s9 = sphi %s1011_s9, %s1287_s9  }
   0x6   : > { %p30_p0 = scmp.ge.s32.totalorder %s28_s16, 2  ;;  %p33_p1 = scmp.lt.s32.totalorder %s983_s13, 1 }
   0x7   : > { %s41_s17 = sadd.s32 1, %s975_s11  ;;  %p48_p2 = scmp.ne.s32.totalorder %s975_s11, %s971_s10 }
   0x8   : > { %s1293_s16 = smov (%p30_p0, %s28_s16), 0  ;;  %p49_p4 = scmp.eq.s32.totalorder %s987_s14, 0 }
   0x9   : > { %s1048_s18 = scalar_select %p33_p1, %s983_s13, 1 }
   0xa   : > { %p36_p3 = scmp.lt.s32.totalorder %s1293_s16, 1  ;;  %p54_p5 = scmp.ne.s32.totalorder %s971_s10, %s967_s9 }
   0xb   : > { %p1053_p6 = scmp.eq.s32.totalorder %s658_s15, 0  ;;  %p1058_p7 = por %p49_p4, %p48_p2 }
   0xc   : > { %s37_s20 = scalar_select %p36_p3, %s1293_s16, 1 }
   0xd   : > { %s1278_s19 = scalar_select %p1053_p6, 1, 0 }
   0xe   : > { %s1279_s21 = scalar_select %p1058_p7, 1, 0 }
   0xf   : > { %p1064_p8 = por %p1053_p6, %p54_p5  ;;  %s38_s23 = ssub.s32 %s1048_s18, %s37_s20 }
  0x10   : > { %p660_p9 = scmp.ge.s32.totalorder %s987_s14, 1  ;;  %p39_p10 = scmp.eq.s32.totalorder %s38_s23, 0 }
  0x11   : > { %s1280_s22 = scalar_select %p1064_p8, 1, 0 }
  0x12   : > { %p112_p11 = scmp.lt.s32.totalorder %s987_s14, 3  ;;  %s989_s26 = smov [#allocation4]  }
  0x13   : > { %s1072_s24 = scalar_select %p39_p10, %s975_s11, %s41_s17  }
  0x14   : > { %p1074_p12 = pnand %p660_p9, %p112_p11  ;;  %s124_s27 = sshll.u32 %s989_s26, 4  ;;  %s125_s27 = int_to_ptr.vmem [resolvable:$true] %s124_s27 }
  0x15   : > { %s877_s3 = scalar_lea.hbm %s1272_s1, 1664 }
  0x16   : > { %s1281_s25 = scalar_select %p1074_p12, 1, 0 }
  0x17   : > { %p817_p13 = pneg %p1074_p12  ;;  %p878_p1 = scmp.ne.s32.totalorder %s1272_s1, %s877_s3 }
  0x18   : > { %p884_p5 = scmp.lt.u32.totalorder %s877_s3, %s1272_s1 }
  0x19   : > { %p1082_p0 = pnand %p817_p13, %p1053_p6 }
  0x1b   : > { %p879_p2 = pneg %p1082_p0 }
  0x1d   : > { %p880_p3 = pnand %p879_p2, %p878_p1 }
  0x1f   : > { %p881_p4 = pneg %p880_p3 }
  0x21   : > { %p886_p9 = pnand %p884_p5, %p881_p4 }
  0x23   : > { %889 = shalt.err (!%p886_p9)
}
  0x24   : > { %s890_s8 = scalar_lea.vmem %s125_s27, 1664  ;;  %p898_p6 = scmp.lt.s32.totalorder %s125_s27, %s125_s27 }
  0x25   : > { %p891_p10 = scmp.ne.s32.totalorder %s125_s27, %s890_s8  ;;  %p899_p8 = scmp.lt.s32.totalorder %s890_s8, %s890_s8 }
  0x27   : > { %p893_p11 = pnand %p891_p10, %p879_p2  ;;  %p900_p12 = por %p899_p8, %p898_p6 }
  0x29   : > { %p894_p13 = pneg %p893_p11 }
  0x2b   : > { %p901_p7 = pnand %p900_p12, %p894_p13 }
  0x2d   : > { %904 = shalt.err (!%p901_p7)
}
  0x2e   : > { %s990_s9 = smov 128   ;;  %s991_s15 = smov 8  }
  0x2f   : > { %820 = dma.hbm_to_vmem [thread:$0]  (!%p1082_p0), %s1272_s1, 1664, %s125_s27, [#allocation5], %s990_s9, %s990_s9, %s991_s15  }
  0x30   : > { %p662_p1 = scmp.ge.s32.totalorder %s987_s14, 2 }
  0x31   : > { %p1283_p3 = scmp.ne.s32.totalorder (!%p662_p1), %s1279_s21, 0 }
  0x32   : > { %134 = sbr.rel (%p662_p1) target bundleno = 92 (0x5c), region = 20 }
  0x39   : > { %137 = sbr.rel (!%p1283_p3) target bundleno = 92 (0x5c), region = 24  ;;  %s138_s23 = sand.u32 (%p1283_p3), 1, %s975_s11  }
  0x3a   : > { %s664_s26 = sshll.u32 (%p1283_p3), %s1048_s18, 4  ;;  %s663_s29 = sshll.u32 (%p1283_p3), %s138_s23, 7 }
  0x3b   : > { %s147_s30 = ssub.s32 (%p1283_p3), 25, %s664_s26  ;;  %s1110_s4 = scalar_lea.sflag (%p1283_p3), [#allocation3], %s138_s23 }
  0x3c   : > { %p148_p6 = scmp.lt.s32.totalorder (%p1283_p3), %s147_s30, 16  ;;  %s142_s27 = scalar_lea.vmem (%p1283_p3), [#allocation2], %s663_s29 }
  0x40   : > { %s1295_s30 = smov (!%p148_p6, %s147_s30), 16 }
  0x41   : > { %s1107_s3 = sshll.u32 %s1295_s30, 7 }
  0x42   : > { %s152_s28 = ssub.s32 2048, %s1107_s3 }
  0x43   : > { %153 = vsyncadd %s1110_s4, %s152_s28  ;;  %p666_p7 = scmp.ne.s32.totalorder %s1107_s3, 0  ;;  %s694_s21 = sshll.u32 %s1048_s18, 11 }
  0x44   : > { %s1118_s7 = scalar_lea.hbm %s1271_s0, %s694_s21  ;;  %s158_s8 = sshll.u32 %s142_s27, 4  ;;  %s1120_s8 = int_to_ptr.vmem [resolvable:$true] %s158_s8 }
  0x45   : > { %s905_s9 = scalar_lea.hbm %s1118_s7, %s1107_s3  ;;  %s909_s18 = scalar_lea.hbm %s1271_s0, 3200 }
  0x46   : > { %p906_p8 = scmp.ne.s32.totalorder %s1118_s7, %s905_s9  ;;  %p910_p2 = scmp.lt.u32.totalorder %s1118_s7, %s1271_s0 }
  0x47   : > { %p911_p4 = scmp.lt.u32.totalorder %s909_s18, %s905_s9  ;;  %p913_p9 = scmp.lt.u32.totalorder %s905_s9, %s1118_s7 }
  0x48   : > { %p907_p12 = pnand %p906_p8, %p666_p7 }
  0x49   : > { %p912_p5 = por %p911_p4, %p910_p2 }
  0x4a   : > { %p908_p0 = pneg %p907_p12 }
  0x4b   : > { %p914_p10 = por %p913_p9, %p912_p5 }
  0x4d   : > { %p915_p11 = pnand %p914_p10, %p908_p0 }
  0x4f   : > { %918 = shalt.err (!%p915_p11)
}
  0x50   : > { %s919_s26 = scalar_lea.vmem %s1120_s8, %s1107_s3  ;;  %s992_s29 = smov [#allocation2]  }
  0x51   : > { %p920_p13 = scmp.ne.s32.totalorder %s1120_s8, %s919_s26  ;;  %s923_s30 = sshll.u32 %s992_s29, 4  ;;  %s924_s30 = int_to_ptr.vmem [resolvable:$false] %s923_s30 }
  0x52   : > { %s925_s28 = scalar_lea.vmem %s924_s30, 4096  ;;  %p926_p6 = scmp.lt.s32.totalorder %s1120_s8, %s924_s30 }
  0x53   : > { %p921_p1 = pnand %p920_p13, %p666_p7  ;;  %p927_p8 = scmp.lt.s32.totalorder %s925_s28, %s919_s26 }
  0x55   : > { %p922_p3 = pneg %p921_p1  ;;  %p928_p12 = por %p927_p8, %p926_p6 }
  0x57   : > { %p929_p2 = pnand %p928_p12, %p922_p3 }
  0x59   : > { %932 = shalt.err (!%p929_p2)
}
  0x5a   : > { %s993_s27 = smov 128   ;;  %s994_s21 = smov 8  }
  0x5b   : > { %164 = dma.hbm_to_vmem [thread:$0]  (%p666_p7), %s1118_s7, %s1107_s3, %s1120_s8, %s1110_s4, %s993_s27, %s993_s27, %s994_s21  }
  0x5c PF: > { %p1284_p0 = scmp.ne.s32.totalorder %s1281_s25, 0 }
  0x5d   : > { %s172_s5 = sand.u32 (!%p1284_p0), 1, %s971_s10   ;;  %p1285_p4 = scmp.ne.s32.totalorder (!%p1284_p0), %s1280_s22, 0 }
  0x5e   : > { %170 = sbr.rel (%p1284_p0) target bundleno = 398 (0x18e), region = 28  ;;  %s671_s6 = sshll.u32 (!%p1284_p0), %s172_s5, 7 }
  0x5f   : > { %s173_s9 = scalar_lea.sflag (!%p1284_p0), [#allocation3], %s172_s5  ;;  %s1150_s15 = scalar_lea.vmem (!%p1284_p0), [#allocation2], %s671_s6 }
  0x65   : > { %958 = dma.done.wait (%p1285_p4), %s173_s9, 2048  }
  0x66   : > { %960 = vsyncadd (%p1285_p4), %s173_s9, 4294965248  ;;  %p1286_p5 = scmp.ne.s32.totalorder %s1278_s19, 0 }
  0x68   : > { %962 = dma.done.wait (%p1286_p5), [#allocation5], 1664  }
  0x69   : > { %964 = vsyncadd (%p1286_p5), [#allocation5], 4294965632  ;;  %v233_v0 = vld [vmem:[#allocation4] sm:$0xff]  ;;  %v234_v1 = vld [vmem:[#allocation4 + $0x8] sm:$0xff]  ;;  %vm246_vm0 = vcmask 818176   ;;  %vm295_vm1 = vcmask 1043456   ;;  %v445_v36 = vlaneseq }
  0x6a   : > { %v235_v2 = vld [vmem:[#allocation4 + $0x10] sm:$0xff]  ;;  %v774_v3 = vpack.c.bf16 %v234_v1, %v233_v0  ;;  %v236_v4 = vld [vmem:[#allocation4 + $0x18] sm:$0xff]  ;;  %v237_v6 = vld [vmem:[#allocation4 + $0x20] sm:$0xff]  ;;  %p208_p7 = scmp.lt.s32.totalorder %s979_s12, 1  ;;  %v995_v35 = vmov 0.0   ;;  %s691_s7 = sshll.u32 %s979_s12, 7 }
  0x6b   : > { %v778_v5 = vpack.c.bf16 %v236_v4, %v235_v2  ;;  %v238_v7 = vld [vmem:[#allocation4 + $0x28] sm:$0xff]  ;;  %v217_v8 = vld [vmem:[%s1150_s15] sm:$0xff]  ;;  %v239_v10 = vld [vmem:[#allocation4 + $0x30] sm:$0xff]  ;;  %v1200_v37 = vshrl.u32 %v445_v36, 7  ;;  %v1204_v39 = vstv %s691_s7 }
  0x6c   : > { %775 = vmatprep.subr.bf16.mxu0 %v774_v3  ;;  %798 = vmatprep.subr.bf16.mxu1 %v774_v3  ;;  %v782_v9 = vpack.c.bf16 %v238_v7, %v237_v6  ;;  %v240_v11 = vld [vmem:[#allocation4 + $0x38] sm:$0xff]  ;;  %v225_v12 = vld [vmem:[%s1150_s15 + $0x40] sm:$0xff]  ;;  %v242_v15 = vld [vmem:[#allocation4 + $0x48] sm:$0xff]  ;;  %s209_s19 = scalar_select %p208_p7, %s979_s12, 1 }
  0x6d   : > { %777 = vmatpush3.bf16.msra.mxu0 %v774_v3  ;;  %805 = vmatpush3.bf16.msra.mxu1 %v774_v3  ;;  %v786_v13 = vpack.c.bf16 %v240_v11, %v239_v10  ;;  %v241_v14 = vld [vmem:[#allocation4 + $0x40] sm:$0xff]  ;;  %v243_v17 = vld [vmem:[#allocation4 + $0x50] sm:$0xff]  ;;  %v244_v18 = vld [vmem:[#allocation4 + $0x58] sm:$0xff]  ;;  %v447_v38 = vadd.s32 8, %v1200_v37  ;;  %v449_v40 = vadd.s32 24, %v1200_v37  ;;  %v448_v41 = vadd.s32 16, %v1200_v37 }
  0x6e   : > { %779 = vmatprep.subr.bf16.mxu0 %v778_v5  ;;  %799 = vmatprep.subr.bf16.mxu1 %v778_v5  ;;  %v790_v16 = vpack.c.bf16 %v242_v15, %v241_v14  ;;  %v794_v19 = vpack.c.bf16 %v244_v18, %v243_v17  ;;  %v245_v20 = vld [vmem:[#allocation4 + $0x60] sm:$0xf]  ;;  %v218_v21 = vld [vmem:[%s1150_s15 + $0x8] sm:$0xff]  ;;  %v219_v23 = vld [vmem:[%s1150_s15 + $0x10] sm:$0xff]  ;;  %s673_s22 = sshll.u32 %s209_s19, 1  ;;  %v464_v43 = vadd.s32 %v1204_v39, %v1200_v37  ;;  %v451_v46 = vadd.s32 40, %v1200_v37 }
  0x6f   : > { %750 = vmatprep.mubr.msk.f32.mxu0 %vm246_vm0, %v217_v8  ;;  %762 = vmatprep.mubr.msk.f32.mxu1 %vm246_vm0, %v225_v12  ;;  %v226_v22 = vld [vmem:[%s1150_s15 + $0x48] sm:$0xff]  ;;  %v227_v24 = vld [vmem:[%s1150_s15 + $0x50] sm:$0xff]  ;;  %v220_v25 = vld [vmem:[%s1150_s15 + $0x18] sm:$0xff]  ;;  %s1197_s4 = scalar_lea.vmem %s1273_s2, %s673_s22  ;;  %v465_v42 = vadd.s32 %v1204_v39, %v447_v38  ;;  %v467_v44 = vadd.s32 %v1204_v39, %v449_v40  ;;  %v466_v45 = vadd.s32 %v1204_v39, %v448_v41  ;;  %v450_v47 = vadd.s32 32, %v1200_v37 }
  0x70   : > { %v228_v26 = vld [vmem:[%s1150_s15 + $0x58] sm:$0xff]  ;;  %v221_v27 = vld [vmem:[%s1150_s15 + $0x20] sm:$0xff]  ;;  %v222_v29 = vld [vmem:[%s1150_s15 + $0x28] sm:$0xff]  ;;  %216 = vst [vmem:[%s1197_s4] sm:$0x3] %v995_v35  ;;  %vm480_vm3 = vcmp.lt.s32.totalorder %v464_v43, 200  ;;  %v453_v52 = vadd.s32 56, %v1200_v37  ;;  %v469_v56 = vadd.s32 %v1204_v39, %v451_v46 }
  0x71   : > { %781 = vmatpush3.bf16.msra.mxu0 %v778_v5  ;;  %806 = vmatpush3.bf16.msra.mxu1 %v778_v5  ;;  %v229_v28 = vld [vmem:[%s1150_s15 + $0x60] sm:$0xff]  ;;  %v230_v30 = vld [vmem:[%s1150_s15 + $0x68] sm:$0xff]  ;;  %v223_v31 = vld [vmem:[%s1150_s15 + $0x30] sm:$0xff]  ;;  %vm481_vm2 = vcmp.lt.s32.totalorder %v465_v42, 200  ;;  %vm483_vm4 = vcmp.lt.s32.totalorder %v467_v44, 200  ;;  %vm482_vm5 = vcmp.lt.s32.totalorder %v466_v45, 200  ;;  %v468_v60 = vadd.s32 %v1204_v39, %v450_v47 }
  0x72   : > { %783 = vmatprep.subr.bf16.mxu0 %v782_v9  ;;  %800 = vmatprep.subr.bf16.mxu1 %v782_v9  ;;  %v231_v32 = vld [vmem:[%s1150_s15 + $0x70] sm:$0xff]  ;;  %v224_v33 = vld [vmem:[%s1150_s15 + $0x38] sm:$0xff]  ;;  %v452_v57 = vadd.s32 48, %v1200_v37  ;;  %v454_v61 = vadd.s32 64, %v1200_v37  ;;  %v455_v63 = vadd.s32 72, %v1200_v37  ;;  %v456_v1 = vadd.s32 80, %v1200_v37 }
  0x73   : > { %v232_v34 = vld [vmem:[%s1150_s15 + $0x78] sm:$0xff]  ;;  %v471_v4 = vadd.s32 %v1204_v39, %v453_v52  ;;  %vm485_vm6 = vcmp.lt.s32.totalorder %v469_v56, 200  ;;  %vm484_vm7 = vcmp.lt.s32.totalorder %v468_v60, 200  ;;  %v457_v14 = vadd.s32 88, %v1200_v37 }
  0x74   : > { %v470_v8 = vadd.s32 %v1204_v39, %v452_v57  ;;  %v472_v11 = vadd.s32 %v1204_v39, %v454_v61  ;;  %v474_v15 = vadd.s32 %v1204_v39, %v456_v1  ;;  %v459_v35 = vadd.s32 104, %v1200_v37 }
  0x75   : > { %785 = vmatpush3.bf16.msra.mxu0 %v782_v9  ;;  %807 = vmatpush3.bf16.msra.mxu1 %v782_v9  ;;  %vm487_vm8 = vcmp.lt.s32.totalorder %v471_v4, 200  ;;  %v460_v46 = vadd.s32 112, %v1200_v37  ;;  %v461_v57 = vadd.s32 120, %v1200_v37 }
  0x76   : > { %787 = vmatprep.subr.bf16.mxu0 %v786_v13  ;;  %801 = vmatprep.subr.bf16.mxu1 %v786_v13  ;;  %vm486_vm9 = vcmp.lt.s32.totalorder %v470_v8, 200  ;;  %vm488_vm10 = vcmp.lt.s32.totalorder %v472_v11, 200  ;;  %vm490_vm12 = vcmp.lt.s32.totalorder %v474_v15, 200 }
  0x79   : > { %789 = vmatpush3.bf16.msra.mxu0 %v786_v13  ;;  %808 = vmatpush3.bf16.msra.mxu1 %v786_v13  ;;  %v473_v13 = vadd.s32 %v1204_v39, %v455_v63 }
  0x7a   : > { %791 = vmatprep.subr.bf16.mxu0 %v790_v16  ;;  %802 = vmatprep.subr.bf16.mxu1 %v790_v16 }
  0x7b   : > { %vm489_vm11 = vcmp.lt.s32.totalorder %v473_v13, 200 }
  0x7d   : > { %793 = vmatpush3.bf16.msra.mxu0 %v790_v16  ;;  %809 = vmatpush3.bf16.msra.mxu1 %v790_v16 }
  0x7e   : > { %795 = vmatprep.subr.bf16.mxu0 %v794_v19  ;;  %803 = vmatprep.subr.bf16.mxu1 %v794_v19 }
  0x81   : > { %797 = vmatpush3.bf16.msra.mxu0 %v794_v19  ;;  %810 = vmatpush3.bf16.msra.mxu1 %v794_v19 }
  0x82   : > { %748 = vmatprep.subr.msk.mxu0 %vm295_vm1, %v245_v20  ;;  %804 = vmatprep.subr.msk.mxu1 %vm295_vm1, %v245_v20 }
  0x85   : > { %749 = vmatpush3.msk.msra.mxu0 %vm295_vm1, %v245_v20  ;;  %811 = vmatpush3.msk.msra.mxu1 %vm295_vm1, %v245_v20 }
  0x86   : > { %751 = vmatmul.mubr.msk.f32.vlgmr.msra.gmra.mrb[0].mxu0 %vm246_vm0, %v218_v21  ;;  %763 = vmatmul.mubr.msk.f32.vlgmr.msra.gmra.mrb[0].mxu1 %vm246_vm0, %v226_v22 }
  0x87   : > { %753 = vmatprep.mubr.msk.f32.mxu0 %vm246_vm0, %v219_v23  ;;  %765 = vmatprep.mubr.msk.f32.mxu1 %vm246_vm0, %v227_v24  ;;  %v458_v24 = vadd.s32 96, %v1200_v37 }
  0x89   : > { %v476_v42 = vadd.s32 %v1204_v39, %v458_v24 }
  0x8a   : > { %754 = vmatmul.mubr.msk.f32.gmra.mrb[2].mxu0 %vm246_vm0, %v220_v25  ;;  %766 = vmatmul.mubr.msk.f32.gmra.mrb[2].mxu1 %vm246_vm0, %v228_v26 }
  0x8b   : > { %756 = vmatprep.mubr.msk.f32.mxu0 %vm246_vm0, %v221_v27  ;;  %768 = vmatprep.mubr.msk.f32.mxu1 %vm246_vm0, %v229_v28  ;;  %vm492_vm14 = vcmp.lt.s32.totalorder %v476_v42, 200 }
  0x8e   : > { %757 = vmatmul.mubr.msk.f32.gmra.mrb[4].mxu0 %vm246_vm0, %v222_v29  ;;  %769 = vmatmul.mubr.msk.f32.gmra.mrb[4].mxu1 %vm246_vm0, %v230_v30  ;;  %v475_v29 = vadd.s32 %v1204_v39, %v457_v14 }
  0x8f   : > { %759 = vmatprep.mubr.msk.f32.mxu0 %vm246_vm0, %v223_v31  ;;  %771 = vmatprep.mubr.msk.f32.mxu1 %vm246_vm0, %v231_v32 }
  0x90   : > { %vm491_vm13 = vcmp.lt.s32.totalorder %v475_v29, 200 }
  0x92   : > { %760 = vmatmul.mubr.msk.f32.gmra.mrb[6].mxu0 %vm246_vm0, %v224_v33  ;;  %772 = vmatmul.mubr.msk.f32.gmra.mrb[6].mxu1 %vm246_vm0, %v232_v34 }
 0x159   : > { %v752_v48 = vpop.f32.mrb[0].mxu0  ;;  %v1215_v49 = vpop.f32.mrb[0].mxu1 }
 0x15a   : > { %v497_v50 = vsel %vm481_vm2, %v752_v48, 0.0  ;;  %v365_v51 = vpop.f32.mrb[1].mxu0  ;;  %v405_v53 = vpop.f32.mrb[1].mxu1  ;;  %v505_v52 = vsel %vm489_vm11, %v1215_v49, 0.0  ;;  %vm571_vm2 = vcmask 1040384  }
 0x15b   : > { %v535_v54 = vmul.f32 %v497_v50, %v497_v50  ;;  %v496_v55 = vsel %vm480_vm3, %v365_v51, 0.0  ;;  %v504_v41 = vsel %vm488_vm10, %v405_v53, 0.0 }
 0x15c   : > { %v513_v58 = vadd.f32 %v497_v50, %v496_v55  ;;  %v534_v59 = vmul.f32 %v496_v55, %v496_v55  ;;  %v542_v51 = vmul.f32 %v504_v41, %v504_v41  ;;  %v477_v55 = vadd.s32 %v1204_v39, %v459_v35 }
 0x15d   : > { %v755_v62 = vpop.f32.mrb[2].mxu0  ;;  %v1223_v0 = vpop.f32.mrb[2].mxu1 }
 0x15e   : > { %v550_v2 = vadd.f32 %v535_v54, %v534_v59  ;;  %v375_v3 = vpop.f32.mrb[3].mxu0  ;;  %v415_v5 = vpop.f32.mrb[3].mxu1  ;;  %v499_v6 = vsel %vm483_vm4, %v755_v62, 0.0  ;;  %v543_v59 = vmul.f32 %v505_v52, %v505_v52  ;;  %v507_v63 = vsel %vm491_vm13, %v1223_v0, 0.0 }
 0x15f   : > { %v498_v7 = vsel %vm482_vm5, %v375_v3, 0.0  ;;  %v537_v17 = vmul.f32 %v499_v6, %v499_v6  ;;  %v506_v54 = vsel %vm490_vm12, %v415_v5, 0.0  ;;  %vm493_vm15 = vcmp.lt.s32.totalorder %v477_v55, 200 }
 0x160   : > { %v514_v9 = vadd.f32 %v513_v58, %v498_v7  ;;  %v536_v10 = vmul.f32 %v498_v7, %v498_v7  ;;  %v478_v58 = vadd.s32 %v1204_v39, %v460_v46  ;;  %v544_v62 = vmul.f32 %v506_v54, %v506_v54 }
 0x161   : > { %v758_v12 = vpop.f32.mrb[4].mxu0  ;;  %v770_v16 = vpop.f32.mrb[4].mxu1  ;;  %v479_v3 = vadd.s32 %v1204_v39, %v461_v57  ;;  %v545_v4 = vmul.f32 %v507_v63, %v507_v63 }
 0x162   : > { %v551_v18 = vadd.f32 %v550_v2, %v536_v10  ;;  %v385_v19 = vpop.f32.mrb[5].mxu0  ;;  %v515_v20 = vadd.f32 %v514_v9, %v499_v6  ;;  %v425_v21 = vpop.f32.mrb[5].mxu1  ;;  %v501_v22 = vsel %vm485_vm6, %v758_v12, 0.0  ;;  %vm494_vm0 = vcmp.lt.s32.totalorder %v478_v58, 200 }
 0x163   : > { %v500_v23 = vsel %vm484_vm7, %v385_v19, 0.0  ;;  %v539_v31 = vmul.f32 %v501_v22, %v501_v22  ;;  %v508_v49 = vsel %vm492_vm14, %v425_v21, 0.0  ;;  %v509_v7 = vsel %vm493_vm15, %v770_v16, 0.0 }
 0x164   : > { %v516_v25 = vadd.f32 %v515_v20, %v500_v23  ;;  %v538_v26 = vmul.f32 %v500_v23, %v500_v23  ;;  %v552_v27 = vadd.f32 %v551_v18, %v537_v17  ;;  %v546_v37 = vmul.f32 %v508_v49, %v508_v49 }
 0x165   : > { %v761_v28 = vpop.f32.mrb[6].mxu0  ;;  %v773_v30 = vpop.f32.mrb[6].mxu1  ;;  %vm495_vm1 = vcmp.lt.s32.totalorder %v479_v3, 200  ;;  %v547_v11 = vmul.f32 %v509_v7, %v509_v7 }
 0x166   : > { %v553_v32 = vadd.f32 %v552_v27, %v538_v26  ;;  %v395_v33 = vpop.f32.mrb[7].mxu0  ;;  %v517_v34 = vadd.f32 %v516_v25, %v501_v22  ;;  %v435_v36 = vpop.f32.mrb[7].mxu1  ;;  %v503_v38 = vsel %vm487_vm8, %v761_v28, 0.0  ;;  %v511_v14 = vsel %vm495_vm1, %v773_v30, 0.0  ;;  %v512_v30 = vld [vmem:[%s1197_s4] sm:$0x3] }
 0x167   : > { %v502_v40 = vsel %vm486_vm9, %v395_v33, 0.0  ;;  %v541_v47 = vmul.f32 %v503_v38, %v503_v38  ;;  %v510_v8 = vsel %vm494_vm0, %v435_v36, 0.0  ;;  %v549_v18 = vmul.f32 %v511_v14, %v511_v14 }
 0x168   : > { %v518_v43 = vadd.f32 %v517_v34, %v502_v40  ;;  %v540_v44 = vmul.f32 %v502_v40, %v502_v40  ;;  %v554_v45 = vadd.f32 %v553_v32, %v539_v31  ;;  %v548_v0 = vmul.f32 %v510_v8, %v510_v8 }
 0x16a   : > { %v555_v48 = vadd.f32 %v554_v45, %v540_v44  ;;  %v519_v50 = vadd.f32 %v518_v43, %v503_v38 }
 0x16c   : > { %v520_v53 = vadd.f32 %v519_v50, %v504_v41  ;;  %v556_v56 = vadd.f32 %v555_v48, %v541_v47 }
 0x16e   : > { %v557_v60 = vadd.f32 %v556_v56, %v542_v51  ;;  %v521_v61 = vadd.f32 %v520_v53, %v505_v52 }
 0x170   : > { %v522_v1 = vadd.f32 %v521_v61, %v506_v54  ;;  %v558_v2 = vadd.f32 %v557_v60, %v543_v59 }
 0x172   : > { %v559_v5 = vadd.f32 %v558_v2, %v544_v62  ;;  %v523_v6 = vadd.f32 %v522_v1, %v507_v63 }
 0x174   : > { %v524_v9 = vadd.f32 %v523_v6, %v508_v49  ;;  %v560_v10 = vadd.f32 %v559_v5, %v545_v4 }
 0x176   : > { %v561_v12 = vadd.f32 %v560_v10, %v546_v37  ;;  %v525_v13 = vadd.f32 %v524_v9, %v509_v7 }
 0x178   : > { %v526_v15 = vadd.f32 %v525_v13, %v510_v8  ;;  %v562_v17 = vadd.f32 %v561_v12, %v547_v11 }
 0x17a   : > { %v527_v39 = vadd.f32 %v526_v15, %v511_v14  ;;  %v563_v19 = vadd.f32 %v562_v17, %v548_v0 }
 0x17c   : > { %v528_v20 = vrot.slane %v527_v39, 4  ;;  %v564_v21 = vadd.f32 %v563_v19, %v549_v18 }
 0x17e   : > { %v529_v22 = vadd.f32 %v528_v20, %v527_v39  ;;  %v565_v16 = vrot.slane %v564_v21, 4 }
 0x180   : > { %v530_v23 = vrot.slane %v529_v22, 2  ;;  %v566_v24 = vadd.f32 %v565_v16, %v564_v21 }
 0x182   : > { %v531_v25 = vadd.f32 %v530_v23, %v529_v22  ;;  %v567_v26 = vrot.slane %v566_v24, 2 }
 0x184   : > { %v532_v27 = vrot.slane %v531_v25, 1  ;;  %v568_v28 = vadd.f32 %v567_v26, %v566_v24 }
 0x186   : > { %v569_v29 = vrot.slane %v568_v28, 1  ;;  %v533_v31 = vadd.f32 %v532_v27, %v531_v25 }
 0x188   : > { %v570_v32 = vadd.f32 %v569_v29, %v568_v28 }
 0x18a   : > { %v572_v33 = vsel %vm571_vm2, %v533_v31, %v570_v32 }
 0x18b   : > { %v573_v34 = vadd.f32 %v572_v33, %v512_v30 }
 0x18d   : > { %574 = vst [vmem:[%s1197_s4] sm:$0x3] %v573_v34 }
 0x18e PF: > { %s16_s14 = sadd.s32 1, %s987_s14   ;;  %s1287_s9 = smov %s971_s10 }
 0x18f   : > { %p13_p9 = scmp.ge.s32.totalorder %s16_s14, 4   ;;  %s1288_s10 = smov %s975_s11 }
 0x190   : > { %s1289_s11 = smov %s1072_s24  ;;  %s1290_s12 = smov %s983_s13 }
 0x191   : > { %s1291_s13 = smov %s1293_s16  ;;  %15 = sbr.rel (!%p13_p9) target bundleno = 5 (0x5), region = 76 }
 0x198   :  { %594 = vsyncpa [#allocation3], 1 }
 0x199   :  { %596 = vsyncpa [#allocation3 + $0x1], 1 }
 0x19a   :  { %597 = vsyncpa [#allocation5], 1 }

</bundles_post_ra>
